<compile_context>
chip_gen: v6e
topology: v6e:2x2x1
jax: 0.10.0
libtpu: 0.0.40
codegen_flags: <defaults>
</compile_context>

<pallas_src>
from functools import partial

import jax
import jax.numpy as jnp
from jax.experimental import pallas as pl
from jax.experimental.pallas import tpu as pltpu


def _tokens_kernel(p_ref, w_ref, pe_ref, o_ref):
    """One grid step == one TILE_M-row slab of tokens.

    p_ref : (TILE_M, K)  flattened patches (compute dtype)
    w_ref : (K, D)       patch-embedding weight (resident, compute dtype)
    pe_ref: (TILE_M, D)  pos-encoding (+ conv bias folded in), f32, resident
    o_ref : (TILE_M, D)  output tokens (float32)
    """
    acc = jnp.dot(p_ref[...], w_ref[...],
                  preferred_element_type=jnp.float32)        # MXU, f32 acc
    o_ref[...] = (acc + pe_ref[...]).astype(o_ref.dtype)     # VPU add


@partial(jax.jit, static_argnames=("patch_size", "target_tile_m", "use_bf16"))
def image_to_tokens(image, conv_weight, conv_bias, pos_encoding, *,
                    patch_size, target_tile_m=512, use_bf16=True):
    """image: (B, C, H, W) float32 (NCHW, like PyTorch).

    conv_weight : (D, C, P, P)
    conv_bias   : (D,)
    pos_encoding: (1, S, D) with S = (H//P) * (W//P)
    returns     : (B, S, D) float32
    """
    B, C, H, W = image.shape
    P = patch_size
    D = conv_weight.shape[0]
    Hp, Wp = H // P, W // P
    S = Hp * Wp
    K = C * P * P

    compute_dtype = jnp.bfloat16 if use_bf16 else jnp.float32
    cbytes = jnp.dtype(compute_dtype).itemsize

    # --- patchify (inside the same jit; cast first so the transpose moves
    # half the bytes when bf16 is enabled) --------------------------------
    img = image.astype(compute_dtype)
    patches = img.reshape(B, C, Hp, P, Wp, P)
    patches = patches.transpose(0, 2, 4, 1, 3, 5).reshape(B * S, K)

    # Conv weight (D, C, P, P) -> (K, D); matches the (c, ki, kj) flattening.
    w_mat = conv_weight.reshape(D, K).T.astype(compute_dtype)

    # Fold conv bias into the positional encoding (one stream instead of two).
    pe = pos_encoding.reshape(S, D).astype(jnp.float32) + conv_bias[None, :]

    # --- choose TILE_M = n*S (whole images per tile) ----------------------
    n = min(B, max(1, target_tile_m // S))
    while (n * S) % 8 != 0:          # keep the sublane dim 8-aligned
        n += 1
    tile_m = n * S
    M = B * S
    num_tiles = -(-M // tile_m)      # cdiv
    m_pad = num_tiles * tile_m
    if m_pad != M:                   # pad partial last tile; sliced off below
        patches = jnp.pad(patches, ((0, m_pad - M), (0, 0)))

    # Pre-tile pos-enc once to exactly one M tile (tiles start on image
    # boundaries, so the per-tile pattern is just S repeated n times).
    pe_tiled = jnp.tile(pe, (n, 1))

    grid_spec = pltpu.PrefetchScalarGridSpec(
        num_scalar_prefetch=0,
        grid=(num_tiles,),
        in_specs=[
            pl.BlockSpec((tile_m, K), lambda i: (i, 0)),   # patches slab
            pl.BlockSpec((K, D), lambda i: (0, 0)),        # weight (resident)
            pl.BlockSpec((tile_m, D), lambda i: (0, 0)),   # pos enc (resident)
        ],
        out_specs=pl.BlockSpec((tile_m, D), lambda i: (i, 0)),
    )

    # Advisory cost hint so XLA schedules the patchify around the custom call.
    cost = pl.CostEstimate(
        flops=2 * m_pad * K * D,
        transcendentals=0,
        bytes_accessed=(m_pad * K * cbytes + K * D * cbytes
                        + tile_m * D * 4 + m_pad * D * 4),
    )

    # Double-buffered per-step footprint; raise the scoped-VMEM limit if a
    # real (ViT-scale) config needs it, but stay <= 64 MiB (v7x physical).
    block_bytes = 2 * (tile_m * K * cbytes + K * D * cbytes
                       + tile_m * D * 4 + tile_m * D * 4)
    vmem_limit = int(min(max(2 * block_bytes, 32 * 1024 * 1024),
                         64 * 1024 * 1024))

    out = pl.pallas_call(
        _tokens_kernel,
        out_shape=jax.ShapeDtypeStruct((m_pad, D), jnp.float32),
        grid_spec=grid_spec,
        compiler_params=pltpu.CompilerParams(
            dimension_semantics=("parallel",),
            vmem_limit_bytes=vmem_limit,
        ),
        cost_estimate=cost,
    )(patches, w_mat, pe_tiled)

    return out[:M].reshape(B, S, D)


def _reference(image, conv_weight, conv_bias, pos_encoding, patch_size):
    """Pure-JAX reference mirroring the PyTorch forward (f32 throughout)."""
    x = jax.lax.conv_general_dilated(
        image, conv_weight,
        window_strides=(patch_size, patch_size),
        padding="VALID",
        dimension_numbers=("NCHW", "OIHW", "NCHW"),
    ) + conv_bias[None, :, None, None]
    B, D = x.shape[0], x.shape[1]
    x = x.reshape(B, D, -1).transpose(0, 2, 1)   # (B, S, D)
    return x + pos_encoding


if __name__ == "__main__":
    # Config: embedding_dim=128, image_shape=(32, 32), patch_size=4
    # (B=5 matches the module's dummy-input batch and is small.)
    B, C, H, W = 5, 3, 32, 32
    P = 4
    D = 128
    S = (H // P) * (W // P)          # 64
    K = C * P * P                    # 48

    key = jax.random.PRNGKey(0)
    k_img, k_w, k_b, k_pe = jax.random.split(key, 4)

    image = jax.random.normal(k_img, (B, C, H, W), dtype=jnp.float32)
    # Shapes as in torch.nn.Conv2d(3, D, P, P); values deterministic.
    conv_weight = jax.random.normal(k_w, (D, C, P, P), dtype=jnp.float32) * 0.05
    conv_bias = jax.random.normal(k_b, (D,), dtype=jnp.float32) * 0.01
    # torch .normal_(0.2) == normal with mean 0.2, std 1.
    pos_encoding = jax.random.normal(k_pe, (1, S, D), dtype=jnp.float32) + 0.2

    ref = _reference(image, conv_weight, conv_bias, pos_encoding, P)

    # f32 path: tight structural/numerical check (single tile covers all rows).
    out_f32 = jax.block_until_ready(
        image_to_tokens(image, conv_weight, conv_bias, pos_encoding,
                        patch_size=P, use_bf16=False))
    assert out_f32.shape == (B, S, D), out_f32.shape
    assert jnp.allclose(out_f32, ref, atol=1e-4, rtol=1e-4), \
        float(jnp.max(jnp.abs(out_f32 - ref)))

    # f32 path with a small tile: exercises the padded-last-tile branch.
    out_pad = jax.block_until_ready(
        image_to_tokens(image, conv_weight, conv_bias, pos_encoding,
                        patch_size=P, target_tile_m=128, use_bf16=False))
    assert out_pad.shape == (B, S, D), out_pad.shape
    assert jnp.allclose(out_pad, ref, atol=1e-4, rtol=1e-4), \
        float(jnp.max(jnp.abs(out_pad - ref)))

    # bf16 fast path (default): looser tolerance for bf16 operands.
    out = jax.block_until_ready(
        image_to_tokens(image, conv_weight, conv_bias, pos_encoding,
                        patch_size=P))
    assert out.shape == (B, S, D), out.shape
    assert jnp.allclose(out, ref, atol=5e-2, rtol=5e-2), \
        float(jnp.max(jnp.abs(out - ref)))

    print("KERNEL_OK")
</pallas_src>

<mosaic_0001>
module attributes {stable_mosaic.version = 11 : i64} {
  func.func @_tokens_kernel(%arg0: i32, %arg1: memref<320x48xf32, #tpu.memory_space<vmem>>, %arg2: memref<48x128xf32, #tpu.memory_space<vmem>>, %arg3: memref<320x128xf32, #tpu.memory_space<vmem>>, %arg4: memref<320x128xf32, #tpu.memory_space<vmem>>) attributes {dimension_semantics = [#tpu.dimension_semantics<parallel>], iteration_bounds = array<i64: 1>, scalar_prefetch = 0 : i64, scratch_operands = 0 : i64, tpu.core_type = #tpu.core_type<tc>, window_params = [{transform_indices = @transform_0, window_bounds = array<i64: 320, 48>}, {pipeline_mode = #tpu.pipeline_mode<synchronous>, transform_indices = @transform_1, window_bounds = array<i64: 48, 128>}, {pipeline_mode = #tpu.pipeline_mode<synchronous>, transform_indices = @transform_2, window_bounds = array<i64: 320, 128>}, {transform_indices = @transform_3, window_bounds = array<i64: 320, 128>}]} {
    %c0 = arith.constant 0 : index
    %c0_0 = arith.constant 0 : index
    %0 = vector.load %arg1[%c0, %c0_0] : memref<320x48xf32, #tpu.memory_space<vmem>>, vector<320x48xf32>
    %c0_1 = arith.constant 0 : index
    %c0_2 = arith.constant 0 : index
    %1 = vector.load %arg2[%c0_1, %c0_2] : memref<48x128xf32, #tpu.memory_space<vmem>>, vector<48x128xf32>
    %cst = arith.constant dense<0.000000e+00> : vector<320x128xf32>
    %2 = tpu.matmul %0, %1, %cst {dimension_numbers = #tpu.dot_dimension_numbers<[1], [0], [0], [1], [0, 0, 1, 1], [], []>} : vector<320x48xf32>, vector<48x128xf32>, vector<320x128xf32> -> vector<320x128xf32>
    %c0_3 = arith.constant 0 : index
    %c0_4 = arith.constant 0 : index
    %3 = vector.load %arg3[%c0_3, %c0_4] : memref<320x128xf32, #tpu.memory_space<vmem>>, vector<320x128xf32>
    %4 = arith.addf %2, %3 : vector<320x128xf32>
    %c0_5 = arith.constant 0 : index
    %c0_6 = arith.constant 0 : index
    %5 = vector.load %arg4[%c0_5, %c0_6] : memref<320x128xf32, #tpu.memory_space<vmem>>, vector<320x128xf32>
    tpu.vector_store %arg4[%c0_5, %c0_6], %4 {strides = array<i32>} : memref<320x128xf32, #tpu.memory_space<vmem>>, vector<320x128xf32>,
    return
  }
  func.func @transform_0(%arg0: i32) -> (i32, i32) {
    %c0_i32 = arith.constant 0 : i32
    %c0_i32_0 = arith.constant 0 : i32
    return %arg0, %c0_i32 : i32, i32
  }
  func.func @transform_1(%arg0: i32) -> (i32, i32) {
    %c0_i32 = arith.constant 0 : i32
    %c0_i32_0 = arith.constant 0 : i32
    %c0_i32_1 = arith.constant 0 : i32
    return %c0_i32, %c0_i32_0 : i32, i32
  }
  func.func @transform_2(%arg0: i32) -> (i32, i32) {
    %c0_i32 = arith.constant 0 : i32
    %c0_i32_0 = arith.constant 0 : i32
    %c0_i32_1 = arith.constant 0 : i32
    return %c0_i32, %c0_i32_0 : i32, i32
  }
  func.func @transform_3(%arg0: i32) -> (i32, i32) {
    %c0_i32 = arith.constant 0 : i32
    %c0_i32_0 = arith.constant 0 : i32
    return %arg0, %c0_i32 : i32, i32
  }
}

</mosaic_0001>

<bundles_post_ra>
// kernel: image_to_tokens.1
= control target key start
LH: loop header
LB: loop body
LE: loop exit
PB: predicated region body
PF: predicated region fallthrough
CT: control target
= control target key end

     0   :  { %vm101_vm0 = vcmask 392192   ;;  %s1062_s0 = inlined_call_operand.vmem [shape: f32[320,48], index: 0, kind: input, shape index: {}]   ;;  %s1063_s1 = inlined_call_operand.vmem [shape: f32[48,128], index: 1, kind: input, shape index: {}]   ;;  %s1064_s2 = inlined_call_operand.vmem [shape: f32[320,128], index: 2, kind: input, shape index: {}]   ;;  %s1065_s3 = inlined_call_operand.hbm [shape: f32[320,128], index: 3, kind: output, shape index: {}]  }
   0x1   :  { %v60_v0 = vld [vmem:[%s1063_s1 + $0x28] sm:$0xff]  ;;  %v59_v1 = vld [vmem:[%s1063_s1 + $0x20] sm:$0xff]  ;;  %v58_v2 = vld [vmem:[%s1063_s1 + $0x18] sm:$0xff] }
   0x2   :  { %629 = vmatprep.subr.mxu0 %v60_v0  ;;  %701 = vmatprep.subr.mxu1 %v60_v0  ;;  %v57_v3 = vld [vmem:[%s1063_s1 + $0x10] sm:$0xff]  ;;  %v56_v4 = vld [vmem:[%s1063_s1 + $0x8] sm:$0xff]  ;;  %v55_v5 = vld [vmem:[%s1063_s1] sm:$0xff] }
   0x3   :  { %630 = vmatpush3.msra.mxu0 %v60_v0  ;;  %707 = vmatpush3.msra.mxu1 %v60_v0  ;;  %v15_v6 = vld [vmem:[%s1062_s0] sm:$0xff]  ;;  %v16_v8 = vld [vmem:[%s1062_s0 + $0x8] sm:$0xff]  ;;  %v17_v10 = vld [vmem:[%s1062_s0 + $0x10] sm:$0xff] }
   0x4   :  { %631 = vmatprep.subr.mxu0 %v59_v1  ;;  %702 = vmatprep.subr.mxu1 %v59_v1  ;;  %v35_v7 = vld [vmem:[%s1062_s0 + $0xa0] sm:$0xff]  ;;  %v36_v9 = vld [vmem:[%s1062_s0 + $0xa8] sm:$0xff]  ;;  %v37_v11 = vld [vmem:[%s1062_s0 + $0xb0] sm:$0xff] }
   0x5   :  { %632 = vmatpush3.msra.mxu0 %v59_v1  ;;  %708 = vmatpush3.msra.mxu1 %v59_v1  ;;  %v18_v12 = vld [vmem:[%s1062_s0 + $0x18] sm:$0xff] }
   0x6   :  { %633 = vmatprep.subr.mxu0 %v58_v2  ;;  %703 = vmatprep.subr.mxu1 %v58_v2  ;;  %v38_v13 = vld [vmem:[%s1062_s0 + $0xb8] sm:$0xff] }
   0x7   :  { %634 = vmatpush3.msra.mxu0 %v58_v2  ;;  %709 = vmatpush3.msra.mxu1 %v58_v2 }
   0x8   :  { %635 = vmatprep.subr.mxu0 %v57_v3  ;;  %704 = vmatprep.subr.mxu1 %v57_v3 }
   0x9   :  { %636 = vmatpush3.msra.mxu0 %v57_v3  ;;  %710 = vmatpush3.msra.mxu1 %v57_v3 }
   0xa   :  { %637 = vmatprep.subr.mxu0 %v56_v4  ;;  %705 = vmatprep.subr.mxu1 %v56_v4 }
   0xb   :  { %638 = vmatpush3.msra.mxu0 %v56_v4  ;;  %711 = vmatpush3.msra.mxu1 %v56_v4 }
   0xc   :  { %639 = vmatprep.subr.mxu0 %v55_v5  ;;  %706 = vmatprep.subr.mxu1 %v55_v5 }
   0xd   :  { %640 = vmatpush3.msra.mxu0 %v55_v5  ;;  %712 = vmatpush3.msra.mxu1 %v55_v5 }
   0xe   :  { %641 = vmatprep.mubr.msk.f32.mxu0 %vm101_vm0, %v15_v6  ;;  %671 = vmatprep.mubr.msk.f32.mxu1 %vm101_vm0, %v35_v7 }
   0xf   :  { %642 = vmatmul.mubr.msk.f32.vlgmr.msra.gmra.mxu0 %vm101_vm0, %v16_v8  ;;  %672 = vmatmul.mubr.msk.f32.vlgmr.msra.gmra.mxu1 %vm101_vm0, %v36_v9 }
  0x10   :  { %644 = vmatprep.mubr.msk.f32.mxu0 %vm101_vm0, %v17_v10  ;;  %674 = vmatprep.mubr.msk.f32.mxu1 %vm101_vm0, %v37_v11 }
  0x11   :  { %8 = vsyncpa [#allocation3], 0  ;;  %v19_v14 = vld [vmem:[%s1062_s0 + $0x20] sm:$0xff]  ;;  %v20_v16 = vld [vmem:[%s1062_s0 + $0x28] sm:$0xff]  ;;  %s738_s9 = smov [#allocation2]  }
  0x12   :  { %v39_v15 = vld [vmem:[%s1062_s0 + $0xc0] sm:$0xff]  ;;  %v40_v17 = vld [vmem:[%s1062_s0 + $0xc8] sm:$0xff]  ;;  %v21_v18 = vld [vmem:[%s1062_s0 + $0x30] sm:$0xff]  ;;  %s532_s10 = sshll.u32 %s738_s9, 4  ;;  %s533_s10 = int_to_ptr.vmem [resolvable:$true] %s532_s10 }
  0x13   :  { %645 = vmatmul.mubr.msk.f32.gmra.mxu0 %vm101_vm0, %v18_v12  ;;  %675 = vmatmul.mubr.msk.f32.gmra.mxu1 %vm101_vm0, %v38_v13  ;;  %v41_v19 = vld [vmem:[%s1062_s0 + $0xd0] sm:$0xff]  ;;  %v22_v20 = vld [vmem:[%s1062_s0 + $0x38] sm:$0xff]  ;;  %v23_v22 = vld [vmem:[%s1062_s0 + $0x40] sm:$0xff]  ;;  %s716_s15 = scalar_lea.vmem %s533_s10, 5120  ;;  %p721_p1 = scmp.lt.s32.totalorder %s533_s10, %s533_s10 }
  0x14   :  { %647 = vmatprep.mubr.msk.f32.mxu0 %vm101_vm0, %v19_v14  ;;  %677 = vmatprep.mubr.msk.f32.mxu1 %vm101_vm0, %v39_v15  ;;  %v42_v21 = vld [vmem:[%s1062_s0 + $0xd8] sm:$0xff]  ;;  %v43_v23 = vld [vmem:[%s1062_s0 + $0xe0] sm:$0xff]  ;;  %v24_v24 = vld [vmem:[%s1062_s0 + $0x48] sm:$0xff]  ;;  %p717_p0 = scmp.ne.s32.totalorder %s533_s10, %s716_s15  ;;  %p722_p2 = scmp.lt.s32.totalorder %s716_s15, %s716_s15 }
  0x15   :  { %v44_v25 = vld [vmem:[%s1062_s0 + $0xe8] sm:$0xff]  ;;  %v25_v26 = vld [vmem:[%s1062_s0 + $0x50] sm:$0xff]  ;;  %v26_v28 = vld [vmem:[%s1062_s0 + $0x58] sm:$0xff] }
  0x16   :  { %v45_v27 = vld [vmem:[%s1062_s0 + $0xf0] sm:$0xff]  ;;  %v46_v29 = vld [vmem:[%s1062_s0 + $0xf8] sm:$0xff]  ;;  %v27_v30 = vld [vmem:[%s1062_s0 + $0x60] sm:$0xff]  ;;  %p723_p3 = por %p722_p2, %p721_p1 }
  0x17   :  { %648 = vmatmul.mubr.msk.f32.gmra.mxu0 %vm101_vm0, %v20_v16  ;;  %678 = vmatmul.mubr.msk.f32.gmra.mxu1 %vm101_vm0, %v40_v17  ;;  %v47_v31 = vld [vmem:[%s1062_s0 + $0x100] sm:$0xff]  ;;  %v28_v32 = vld [vmem:[%s1062_s0 + $0x68] sm:$0xff]  ;;  %v29_v34 = vld [vmem:[%s1062_s0 + $0x70] sm:$0xff] }
  0x18   :  { %650 = vmatprep.mubr.msk.f32.mxu0 %vm101_vm0, %v21_v18  ;;  %680 = vmatprep.mubr.msk.f32.mxu1 %vm101_vm0, %v41_v19  ;;  %v48_v33 = vld [vmem:[%s1062_s0 + $0x108] sm:$0xff]  ;;  %v49_v35 = vld [vmem:[%s1062_s0 + $0x110] sm:$0xff]  ;;  %v30_v36 = vld [vmem:[%s1062_s0 + $0x78] sm:$0xff]  ;;  %p724_p4 = pnand %p723_p3, %p717_p0 }
  0x19   :  { %v50_v37 = vld [vmem:[%s1062_s0 + $0x118] sm:$0xff]  ;;  %v31_v38 = vld [vmem:[%s1062_s0 + $0x80] sm:$0xff]  ;;  %v32_v40 = vld [vmem:[%s1062_s0 + $0x88] sm:$0xff] }
  0x1a   :  { %v51_v39 = vld [vmem:[%s1062_s0 + $0x120] sm:$0xff]  ;;  %v52_v41 = vld [vmem:[%s1062_s0 + $0x128] sm:$0xff]  ;;  %v33_v42 = vld [vmem:[%s1062_s0 + $0x90] sm:$0xff] }
  0x1b   :  { %651 = vmatmul.mubr.msk.f32.gmra.mxu0 %vm101_vm0, %v22_v20  ;;  %681 = vmatmul.mubr.msk.f32.gmra.mxu1 %vm101_vm0, %v42_v21  ;;  %v53_v43 = vld [vmem:[%s1062_s0 + $0x130] sm:$0xff]  ;;  %v34_v44 = vld [vmem:[%s1062_s0 + $0x98] sm:$0xff]  ;;  %v62_v46 = vld [vmem:[%s1064_s2 + $0x8] sm:$0xff] }
  0x1c   :  { %653 = vmatprep.mubr.msk.f32.mxu0 %vm101_vm0, %v23_v22  ;;  %683 = vmatprep.mubr.msk.f32.mxu1 %vm101_vm0, %v43_v23  ;;  %v54_v45 = vld [vmem:[%s1062_s0 + $0x138] sm:$0xff]  ;;  %v82_v47 = vld [vmem:[%s1064_s2 + $0xa8] sm:$0xff]  ;;  %v61_v50 = vld [vmem:[%s1064_s2] sm:$0xff] }
  0x1d   :  { %v81_v51 = vld [vmem:[%s1064_s2 + $0xa0] sm:$0xff]  ;;  %v64_v56 = vld [vmem:[%s1064_s2 + $0x18] sm:$0xff]  ;;  %v63_v62 = vld [vmem:[%s1064_s2 + $0x10] sm:$0xff] }
  0x1e   :  { %v84_v57 = vld [vmem:[%s1064_s2 + $0xb8] sm:$0xff]  ;;  %v83_v63 = vld [vmem:[%s1064_s2 + $0xb0] sm:$0xff]  ;;  %v66_v4 = vld [vmem:[%s1064_s2 + $0x28] sm:$0xff] }
  0x1f   :  { %654 = vmatmul.mubr.msk.f32.gmra.mxu0 %vm101_vm0, %v24_v24  ;;  %684 = vmatmul.mubr.msk.f32.gmra.mxu1 %vm101_vm0, %v44_v25  ;;  %v86_v5 = vld [vmem:[%s1064_s2 + $0xc8] sm:$0xff]  ;;  %v65_v10 = vld [vmem:[%s1064_s2 + $0x20] sm:$0xff]  ;;  %v68_v16 = vld [vmem:[%s1064_s2 + $0x38] sm:$0xff] }
  0x20   :  { %656 = vmatprep.mubr.msk.f32.mxu0 %vm101_vm0, %v25_v26  ;;  %686 = vmatprep.mubr.msk.f32.mxu1 %vm101_vm0, %v45_v27  ;;  %v85_v11 = vld [vmem:[%s1064_s2 + $0xc0] sm:$0xff]  ;;  %v88_v17 = vld [vmem:[%s1064_s2 + $0xd8] sm:$0xff]  ;;  %v67_v22 = vld [vmem:[%s1064_s2 + $0x30] sm:$0xff] }
  0x21   :  { %v87_v23 = vld [vmem:[%s1064_s2 + $0xd0] sm:$0xff] }
  0x23   :  { %657 = vmatmul.mubr.msk.f32.gmra.mxu0 %vm101_vm0, %v26_v28  ;;  %687 = vmatmul.mubr.msk.f32.gmra.mxu1 %vm101_vm0, %v46_v29  ;;  %v70_v28 = vld [vmem:[%s1064_s2 + $0x48] sm:$0xff] }
  0x24   :  { %659 = vmatprep.mubr.msk.f32.mxu0 %vm101_vm0, %v27_v30  ;;  %689 = vmatprep.mubr.msk.f32.mxu1 %vm101_vm0, %v47_v31  ;;  %v90_v29 = vld [vmem:[%s1064_s2 + $0xe8] sm:$0xff] }
  0x27   :  { %660 = vmatmul.mubr.msk.f32.gmra.mxu0 %vm101_vm0, %v28_v32  ;;  %690 = vmatmul.mubr.msk.f32.gmra.mxu1 %vm101_vm0, %v48_v33 }
  0x28   :  { %662 = vmatprep.mubr.msk.f32.mxu0 %vm101_vm0, %v29_v34  ;;  %692 = vmatprep.mubr.msk.f32.mxu1 %vm101_vm0, %v49_v35  ;;  %v69_v34 = vld [vmem:[%s1064_s2 + $0x40] sm:$0xff] }
  0x29   :  { %v89_v35 = vld [vmem:[%s1064_s2 + $0xe0] sm:$0xff] }
  0x2b   :  { %663 = vmatmul.mubr.msk.f32.gmra.mxu0 %vm101_vm0, %v30_v36  ;;  %693 = vmatmul.mubr.msk.f32.gmra.mxu1 %vm101_vm0, %v50_v37 }
  0x2c   :  { %665 = vmatprep.mubr.msk.f32.mxu0 %vm101_vm0, %v31_v38  ;;  %695 = vmatprep.mubr.msk.f32.mxu1 %vm101_vm0, %v51_v39 }
  0x2f   :  { %666 = vmatmul.mubr.msk.f32.gmra.mxu0 %vm101_vm0, %v32_v40  ;;  %696 = vmatmul.mubr.msk.f32.gmra.mxu1 %vm101_vm0, %v52_v41  ;;  %v72_v40 = vld [vmem:[%s1064_s2 + $0x58] sm:$0xff] }
  0x30   :  { %668 = vmatprep.mubr.msk.f32.mxu0 %vm101_vm0, %v33_v42  ;;  %698 = vmatprep.mubr.msk.f32.mxu1 %vm101_vm0, %v53_v43  ;;  %v92_v41 = vld [vmem:[%s1064_s2 + $0xf8] sm:$0xff] }
  0x33   :  { %669 = vmatmul.mubr.msk.f32.gmra.mxu0 %vm101_vm0, %v34_v44  ;;  %699 = vmatmul.mubr.msk.f32.gmra.mxu1 %vm101_vm0, %v54_v45 }
  0xcf   :  { %v643_v48 = vpop.f32.mrf.mxu0  ;;  %v673_v49 = vpop.f32.mrf.mxu1 }
  0xd0   :  { %v294_v52 = vadd.f32 %v643_v48, %v62_v46  ;;  %v394_v53 = vadd.f32 %v673_v49, %v82_v47  ;;  %v71_v46 = vld [vmem:[%s1064_s2 + $0x50] sm:$0xff] }
  0xd1   :  { %v288_v54 = vpop.f32.mrf.mxu0  ;;  %v388_v55 = vpop.f32.mrf.mxu1  ;;  %v91_v47 = vld [vmem:[%s1064_s2 + $0xf0] sm:$0xff] }
  0xd2   :  { %488 = vst [vmem:[#allocation2 + $0x8] sm:$0xff] %v294_v52  ;;  %508 = vst [vmem:[#allocation2 + $0xa8] sm:$0xff] %v394_v53  ;;  %v289_v58 = vadd.f32 %v288_v54, %v61_v50  ;;  %v389_v59 = vadd.f32 %v388_v55, %v81_v51  ;;  %v74_v52 = vld [vmem:[%s1064_s2 + $0x68] sm:$0xff] }
  0xd3   :  { %v646_v60 = vpop.f32.mrf.mxu0  ;;  %v676_v61 = vpop.f32.mrf.mxu1  ;;  %v94_v53 = vld [vmem:[%s1064_s2 + $0x108] sm:$0xff] }
  0xd4   :  { %487 = vst [vmem:[#allocation2] sm:$0xff] %v289_v58  ;;  %507 = vst [vmem:[#allocation2 + $0xa0] sm:$0xff] %v389_v59  ;;  %v304_v0 = vadd.f32 %v646_v60, %v64_v56  ;;  %v404_v1 = vadd.f32 %v676_v61, %v84_v57  ;;  %v73_v58 = vld [vmem:[%s1064_s2 + $0x60] sm:$0xff] }
  0xd5   :  { %v298_v2 = vpop.f32.mrf.mxu0  ;;  %v398_v3 = vpop.f32.mrf.mxu1  ;;  %v93_v59 = vld [vmem:[%s1064_s2 + $0x100] sm:$0xff] }
  0xd6   :  { %490 = vst [vmem:[#allocation2 + $0x18] sm:$0xff] %v304_v0  ;;  %510 = vst [vmem:[#allocation2 + $0xb8] sm:$0xff] %v404_v1  ;;  %v299_v6 = vadd.f32 %v298_v2, %v63_v62  ;;  %v399_v7 = vadd.f32 %v398_v3, %v83_v63  ;;  %v76_v0 = vld [vmem:[%s1064_s2 + $0x78] sm:$0xff] }
  0xd7   :  { %v649_v8 = vpop.f32.mrf.mxu0  ;;  %v679_v9 = vpop.f32.mrf.mxu1  ;;  %v96_v1 = vld [vmem:[%s1064_s2 + $0x118] sm:$0xff] }
  0xd8   :  { %489 = vst [vmem:[#allocation2 + $0x10] sm:$0xff] %v299_v6  ;;  %509 = vst [vmem:[#allocation2 + $0xb0] sm:$0xff] %v399_v7  ;;  %v314_v12 = vadd.f32 %v649_v8, %v66_v4  ;;  %v414_v13 = vadd.f32 %v679_v9, %v86_v5  ;;  %v75_v6 = vld [vmem:[%s1064_s2 + $0x70] sm:$0xff] }
  0xd9   :  { %v308_v14 = vpop.f32.mrf.mxu0  ;;  %v408_v15 = vpop.f32.mrf.mxu1  ;;  %v95_v7 = vld [vmem:[%s1064_s2 + $0x110] sm:$0xff] }
  0xda   :  { %492 = vst [vmem:[#allocation2 + $0x28] sm:$0xff] %v314_v12  ;;  %512 = vst [vmem:[#allocation2 + $0xc8] sm:$0xff] %v414_v13  ;;  %v309_v18 = vadd.f32 %v308_v14, %v65_v10  ;;  %v409_v19 = vadd.f32 %v408_v15, %v85_v11  ;;  %v78_v12 = vld [vmem:[%s1064_s2 + $0x88] sm:$0xff] }
  0xdb   :  { %v652_v20 = vpop.f32.mrf.mxu0  ;;  %v682_v21 = vpop.f32.mrf.mxu1  ;;  %v98_v13 = vld [vmem:[%s1064_s2 + $0x128] sm:$0xff] }
  0xdc   :  { %491 = vst [vmem:[#allocation2 + $0x20] sm:$0xff] %v309_v18  ;;  %511 = vst [vmem:[#allocation2 + $0xc0] sm:$0xff] %v409_v19  ;;  %v324_v24 = vadd.f32 %v652_v20, %v68_v16  ;;  %v424_v25 = vadd.f32 %v682_v21, %v88_v17  ;;  %v77_v18 = vld [vmem:[%s1064_s2 + $0x80] sm:$0xff] }
  0xdd   :  { %v318_v26 = vpop.f32.mrf.mxu0  ;;  %v418_v27 = vpop.f32.mrf.mxu1  ;;  %v97_v19 = vld [vmem:[%s1064_s2 + $0x120] sm:$0xff] }
  0xde   :  { %494 = vst [vmem:[#allocation2 + $0x38] sm:$0xff] %v324_v24  ;;  %514 = vst [vmem:[#allocation2 + $0xd8] sm:$0xff] %v424_v25  ;;  %v319_v30 = vadd.f32 %v318_v26, %v67_v22  ;;  %v419_v31 = vadd.f32 %v418_v27, %v87_v23  ;;  %v80_v24 = vld [vmem:[%s1064_s2 + $0x98] sm:$0xff] }
  0xdf   :  { %v655_v32 = vpop.f32.mrf.mxu0  ;;  %v685_v33 = vpop.f32.mrf.mxu1  ;;  %v100_v25 = vld [vmem:[%s1064_s2 + $0x138] sm:$0xff] }
  0xe0   :  { %493 = vst [vmem:[#allocation2 + $0x30] sm:$0xff] %v319_v30  ;;  %513 = vst [vmem:[#allocation2 + $0xd0] sm:$0xff] %v419_v31  ;;  %v334_v36 = vadd.f32 %v655_v32, %v70_v28  ;;  %v434_v37 = vadd.f32 %v685_v33, %v90_v29  ;;  %v79_v30 = vld [vmem:[%s1064_s2 + $0x90] sm:$0xff] }
  0xe1   :  { %v328_v38 = vpop.f32.mrf.mxu0  ;;  %v428_v39 = vpop.f32.mrf.mxu1  ;;  %v99_v31 = vld [vmem:[%s1064_s2 + $0x130] sm:$0xff] }
  0xe2   :  { %496 = vst [vmem:[#allocation2 + $0x48] sm:$0xff] %v334_v36  ;;  %516 = vst [vmem:[#allocation2 + $0xe8] sm:$0xff] %v434_v37  ;;  %v329_v42 = vadd.f32 %v328_v38, %v69_v34  ;;  %v429_v43 = vadd.f32 %v428_v39, %v89_v35 }
  0xe3   :  { %v658_v44 = vpop.f32.mrf.mxu0  ;;  %v688_v45 = vpop.f32.mrf.mxu1 }
  0xe4   :  { %495 = vst [vmem:[#allocation2 + $0x40] sm:$0xff] %v329_v42  ;;  %515 = vst [vmem:[#allocation2 + $0xe0] sm:$0xff] %v429_v43  ;;  %v344_v48 = vadd.f32 %v658_v44, %v72_v40  ;;  %v444_v49 = vadd.f32 %v688_v45, %v92_v41 }
  0xe5   :  { %v338_v50 = vpop.f32.mrf.mxu0  ;;  %v438_v51 = vpop.f32.mrf.mxu1 }
  0xe6   :  { %498 = vst [vmem:[#allocation2 + $0x58] sm:$0xff] %v344_v48  ;;  %518 = vst [vmem:[#allocation2 + $0xf8] sm:$0xff] %v444_v49  ;;  %v339_v54 = vadd.f32 %v338_v50, %v71_v46  ;;  %v439_v55 = vadd.f32 %v438_v51, %v91_v47 }
  0xe7   :  { %v661_v56 = vpop.f32.mrf.mxu0  ;;  %v691_v57 = vpop.f32.mrf.mxu1 }
  0xe8   :  { %497 = vst [vmem:[#allocation2 + $0x50] sm:$0xff] %v339_v54  ;;  %517 = vst [vmem:[#allocation2 + $0xf0] sm:$0xff] %v439_v55  ;;  %v354_v60 = vadd.f32 %v661_v56, %v74_v52  ;;  %v454_v61 = vadd.f32 %v691_v57, %v94_v53 }
  0xe9   :  { %v348_v62 = vpop.f32.mrf.mxu0  ;;  %v448_v63 = vpop.f32.mrf.mxu1 }
  0xea   :  { %500 = vst [vmem:[#allocation2 + $0x68] sm:$0xff] %v354_v60  ;;  %520 = vst [vmem:[#allocation2 + $0x108] sm:$0xff] %v454_v61  ;;  %v349_v2 = vadd.f32 %v348_v62, %v73_v58  ;;  %v449_v3 = vadd.f32 %v448_v63, %v93_v59 }
  0xeb   :  { %v664_v4 = vpop.f32.mrf.mxu0  ;;  %v694_v5 = vpop.f32.mrf.mxu1 }
  0xec   :  { %499 = vst [vmem:[#allocation2 + $0x60] sm:$0xff] %v349_v2  ;;  %519 = vst [vmem:[#allocation2 + $0x100] sm:$0xff] %v449_v3  ;;  %v364_v8 = vadd.f32 %v664_v4, %v76_v0  ;;  %v464_v9 = vadd.f32 %v694_v5, %v96_v1 }
  0xed   :  { %v358_v10 = vpop.f32.mrf.mxu0  ;;  %v458_v11 = vpop.f32.mrf.mxu1 }
  0xee   :  { %502 = vst [vmem:[#allocation2 + $0x78] sm:$0xff] %v364_v8  ;;  %522 = vst [vmem:[#allocation2 + $0x118] sm:$0xff] %v464_v9  ;;  %v359_v14 = vadd.f32 %v358_v10, %v75_v6  ;;  %v459_v15 = vadd.f32 %v458_v11, %v95_v7 }
  0xef   :  { %v667_v16 = vpop.f32.mrf.mxu0  ;;  %v697_v17 = vpop.f32.mrf.mxu1 }
  0xf0   :  { %501 = vst [vmem:[#allocation2 + $0x70] sm:$0xff] %v359_v14  ;;  %521 = vst [vmem:[#allocation2 + $0x110] sm:$0xff] %v459_v15  ;;  %v374_v20 = vadd.f32 %v667_v16, %v78_v12  ;;  %v474_v21 = vadd.f32 %v697_v17, %v98_v13 }
  0xf1   :  { %v368_v22 = vpop.f32.mrf.mxu0  ;;  %v468_v23 = vpop.f32.mrf.mxu1 }
  0xf2   :  { %504 = vst [vmem:[#allocation2 + $0x88] sm:$0xff] %v374_v20  ;;  %524 = vst [vmem:[#allocation2 + $0x128] sm:$0xff] %v474_v21  ;;  %v369_v26 = vadd.f32 %v368_v22, %v77_v18  ;;  %v469_v27 = vadd.f32 %v468_v23, %v97_v19 }
  0xf3   :  { %v670_v28 = vpop.f32.mrf.mxu0  ;;  %v700_v29 = vpop.f32.mrf.mxu1 }
  0xf4   :  { %503 = vst [vmem:[#allocation2 + $0x80] sm:$0xff] %v369_v26  ;;  %523 = vst [vmem:[#allocation2 + $0x120] sm:$0xff] %v469_v27  ;;  %v384_v32 = vadd.f32 %v670_v28, %v80_v24  ;;  %v484_v33 = vadd.f32 %v700_v29, %v100_v25 }
  0xf5   :  { %v378_v34 = vpop.f32.mrf.mxu0  ;;  %v478_v35 = vpop.f32.mrf.mxu1 }
  0xf6   :  { %506 = vst [vmem:[#allocation2 + $0x98] sm:$0xff] %v384_v32  ;;  %526 = vst [vmem:[#allocation2 + $0x138] sm:$0xff] %v484_v33  ;;  %v379_v36 = vadd.f32 %v378_v34, %v79_v30  ;;  %v479_v37 = vadd.f32 %v478_v35, %v99_v31 }
  0xf8   :  { %505 = vst [vmem:[#allocation2 + $0x90] sm:$0xff] %v379_v36  ;;  %525 = vst [vmem:[#allocation2 + $0x130] sm:$0xff] %v479_v37 }
  0xf9   :  { %727 = shalt.err (!%p724_p4)
}
  0xfa   :  { %s739_s2 = smov 128   ;;  %s740_s16 = smov 8  }
  0xfb   :  { %538 = dma.vmem_to_hbm [thread:$0]  %s533_s10, 5120, %s1065_s3, [#allocation3], %s739_s2, %s739_s2, %s740_s16  }
  0xfc   :  { %736 = dma.done.wait [#allocation3], 5120  }
  0xfd   :  { %737 = vsyncadd [#allocation3], 4294962176 }
  0xfe   :  { %542 = vsyncpa [#allocation3], 1 }

</bundles_post_ra>
